<compile_context>
chip_gen: v7x
topology: tpu7x:2x2x1
jax: 0.10.0
libtpu: 0.0.40
codegen_flags: <defaults>
</compile_context>

<pallas_src>
import functools

import jax
import jax.numpy as jnp
import numpy as np
from jax.experimental import pallas as pl
from jax.experimental.pallas import tpu as pltpu

K = 3      # kernel_size
PAD = 1    # padding
EPS = 1e-5  # BatchNorm2d default eps


def _conv_stats_kernel(w_ref, x_ref, y_ref, ssum_ref, ssq_ref, *, cin, cout, h, w):
    """One batch element: 3x3 conv via 9 MXU matmuls + per-channel sum / sumsq.

    w_ref : (9, C_out, C_in) VMEM  -- tap-major weights, resident across the grid.
    x_ref : (1, C_in, L)     VMEM  -- flat spatial, L = H*W + 2*(W+1) (zero halo).
    y_ref : (1, C_out, H*W)  VMEM  -- channel-major, lane-dense conv output.
    ssum_ref/ssq_ref : (1, C_out, 1) per-batch partial BN statistics.
    """
    hw = h * w

    # Column masks for the width halo: kw=0 / kw=2 taps read across row boundaries
    # in the flattened layout, so lanes with w==0 / w==W-1 must be zeroed.
    col = jax.lax.broadcasted_iota(jnp.int32, (1, hw), 1) % w
    left_ok = (col != 0).astype(jnp.float32)       # for kw == 0
    right_ok = (col != w - 1).astype(jnp.float32)  # for kw == 2

    acc = jnp.zeros((cout, hw), jnp.float32)
    for kh in range(K):
        for kw in range(K):
            start = kh * w + kw                       # static lane offset
            xs = x_ref[0, :, start:start + hw]        # (C_in, H*W) shifted tap slab
            if kw == 0:
                xs = xs * left_ok
            elif kw == K - 1:
                xs = xs * right_ok
            w_tap = w_ref[kh * K + kw]                # (C_out, C_in)
            acc = acc + jnp.dot(w_tap, xs, preferred_element_type=jnp.float32)

    y_ref[0] = acc
    ssum_ref[0] = jnp.sum(acc, axis=1, keepdims=True)        # (C_out, 1)
    ssq_ref[0] = jnp.sum(acc * acc, axis=1, keepdims=True)   # (C_out, 1)


def _bn_apply_kernel(y_ref, scale_ref, shift_ref, o_ref):
    """Apply y*scale + shift on channel-major lane-dense blocks (no ReLU)."""
    o_ref[0] = y_ref[0] * scale_ref[...] + shift_ref[...]


@jax.jit
def conv_bn(x, weight, gamma, beta):
    """x: (N, C_in, H, W) f32; weight: (C_out, C_in, 3, 3) f32."""
    n, cin, h, w = x.shape
    cout = weight.shape[0]
    hw = h * w
    l = hw + 2 * (w + 1)

    x = x.astype(jnp.float32)
    weight = weight.astype(jnp.float32)

    # Flat spatial layout with a zero halo of W+1 on each side (covers the kh halo).
    x_flat = jnp.pad(x.reshape(n, cin, hw), ((0, 0), (0, 0), (w + 1, w + 1)))
    # Tap-major weights: w9[kh*3+kw, co, ci] = weight[co, ci, kh, kw].
    w9 = weight.transpose(2, 3, 0, 1).reshape(K * K, cout, cin)

    conv_kernel = functools.partial(_conv_stats_kernel, cin=cin, cout=cout, h=h, w=w)
    y, ssum, ssq = pl.pallas_call(
        conv_kernel,
        out_shape=(
            jax.ShapeDtypeStruct((n, cout, hw), jnp.float32),
            jax.ShapeDtypeStruct((n, cout, 1), jnp.float32),
            jax.ShapeDtypeStruct((n, cout, 1), jnp.float32),
        ),
        grid=(n,),
        in_specs=[
            pl.BlockSpec((K * K, cout, cin), lambda i: (0, 0, 0)),   # weights in VMEM
            pl.BlockSpec((1, cin, l), lambda i: (i, 0, 0)),
        ],
        out_specs=[
            pl.BlockSpec((1, cout, hw), lambda i: (i, 0, 0)),
            pl.BlockSpec((1, cout, 1), lambda i: (i, 0, 0)),
            pl.BlockSpec((1, cout, 1), lambda i: (i, 0, 0)),
        ],
        compiler_params=pltpu.CompilerParams(dimension_semantics=("parallel",)),
    )(w9, x_flat)

    # Tiny (N*C_out scalars) reduction + BN coefficients; single-pass variance.
    m = jnp.float32(n * hw)
    total = jnp.sum(ssum[:, :, 0], axis=0)                   # (C_out,)
    total_sq = jnp.sum(ssq[:, :, 0], axis=0)                 # (C_out,)
    mean = total / m
    var = jnp.maximum(total_sq / m - mean * mean, 0.0)       # biased batch variance
    inv = jax.lax.rsqrt(var + EPS)
    g = gamma.astype(jnp.float32)
    b = beta.astype(jnp.float32)
    scale = (g * inv).reshape(cout, 1)
    shift = (b - mean * g * inv).reshape(cout, 1)

    out = pl.pallas_call(
        _bn_apply_kernel,
        out_shape=jax.ShapeDtypeStruct((n, cout, hw), jnp.float32),
        grid=(n,),
        in_specs=[
            pl.BlockSpec((1, cout, hw), lambda i: (i, 0, 0)),
            pl.BlockSpec((cout, 1), lambda i: (0, 0)),
            pl.BlockSpec((cout, 1), lambda i: (0, 0)),
        ],
        out_specs=pl.BlockSpec((1, cout, hw), lambda i: (i, 0, 0)),
        compiler_params=pltpu.CompilerParams(dimension_semantics=("parallel",)),
    )(y, scale, shift)

    # Free contiguous reshape back to NCHW (no transpose).
    return out.reshape(n, cout, h, w)


def _reference(x, weight, gamma, beta):
    y = jax.lax.conv_general_dilated(
        x, weight, window_strides=(1, 1),
        padding=((PAD, PAD), (PAD, PAD)),
        dimension_numbers=("NCHW", "OIHW", "NCHW"))
    mean = y.mean(axis=(0, 2, 3), keepdims=True)
    var = ((y - mean) ** 2).mean(axis=(0, 2, 3), keepdims=True)
    yhat = (y - mean) / jnp.sqrt(var + EPS)
    return yhat * gamma.reshape(1, -1, 1, 1) + beta.reshape(1, -1, 1, 1)


if __name__ == "__main__":
    N, CIN, COUT, H, W = 2, 4, 8, 16, 16

    key = jax.random.PRNGKey(0)
    kx, kwk = jax.random.split(key)
    x = jax.random.normal(kx, (N, CIN, H, W), dtype=jnp.float32)
    weight = 0.1 * jax.random.normal(kwk, (COUT, CIN, K, K), dtype=jnp.float32)
    gamma = jnp.ones((COUT,), jnp.float32)    # BatchNorm2d default init
    beta = jnp.zeros((COUT,), jnp.float32)

    out = jax.block_until_ready(conv_bn(x, weight, gamma, beta))
    ref = jax.block_until_ready(_reference(x, weight, gamma, beta))

    assert out.shape == (N, COUT, H, W)
    assert np.allclose(np.asarray(out), np.asarray(ref), atol=2e-4, rtol=2e-4), (
        "mismatch vs JAX reference")
    print("KERNEL_OK")
</pallas_src>

<mosaic_0001>
module attributes {stable_mosaic.version = 11 : i64} {
  func.func @_conv_stats_kernel(%arg0: i32, %arg1: memref<9x8x4xf32, #tpu.memory_space<vmem>>, %arg2: memref<1x4x290xf32, #tpu.memory_space<vmem>>, %arg3: memref<1x8x256xf32, #tpu.memory_space<vmem>>, %arg4: memref<1x8x1xf32, #tpu.memory_space<vmem>>, %arg5: memref<1x8x1xf32, #tpu.memory_space<vmem>>) attributes {dimension_semantics = [#tpu.dimension_semantics<parallel>], iteration_bounds = array<i64: 2>, scalar_prefetch = 0 : i64, scratch_operands = 0 : i64, tpu.core_type = #tpu.core_type<tc>, window_params = [{pipeline_mode = #tpu.pipeline_mode<synchronous>, transform_indices = @transform_0, window_bounds = array<i64: 9, 8, 4>}, {transform_indices = @transform_1, window_bounds = array<i64: 1, 4, 290>}, {transform_indices = @transform_2, window_bounds = array<i64: 1, 8, 256>}, {transform_indices = @transform_3, window_bounds = array<i64: 1, 8, 1>}, {transform_indices = @transform_4, window_bounds = array<i64: 1, 8, 1>}]} {
    %0 = tpu.iota {dimensions = array<i32: 1>} : vector<1x256xi32>
    %c16_i32 = arith.constant 16 : i32
    %c0_i32 = arith.constant 0 : i32
    %1 = arith.cmpi eq, %c16_i32, %c0_i32 : i32
    %c1_i32 = arith.constant 1 : i32
    %2 = arith.select %1, %c1_i32, %c16_i32 : i32
    %3 = vector.broadcast %2 : i32 to vector<1x256xi32>
    %4 = arith.remsi %0, %3 : vector<1x256xi32>
    %c0_i32_0 = arith.constant 0 : i32
    %5 = vector.broadcast %c0_i32_0 : i32 to vector<1x256xi32>
    %6 = arith.cmpi ne, %4, %5 : vector<1x256xi32>
    %c0_i32_1 = arith.constant 0 : i32
    %7 = vector.broadcast %c0_i32_1 : i32 to vector<1x256xi32>
    %8 = arith.cmpi slt, %4, %7 : vector<1x256xi32>
    %c0_i32_2 = arith.constant 0 : i32
    %9 = arith.cmpi slt, %2, %c0_i32_2 : i32
    %10 = vector.broadcast %9 : i1 to vector<1x256xi1>
    %11 = vector.broadcast %10 : vector<1x256xi1> to vector<1x256xi1>
    %12 = arith.xori %8, %11 : vector<1x256xi1>
    %13 = arith.andi %12, %6 : vector<1x256xi1>
    %14 = vector.broadcast %2 : i32 to vector<1x256xi32>
    %15 = arith.addi %4, %14 : vector<1x256xi32>
    %16 = arith.select %13, %15, %4 : vector<1x256xi1>, vector<1x256xi32>
    %c0_i32_3 = arith.constant 0 : i32
    %17 = vector.broadcast %c0_i32_3 : i32 to vector<1x256xi32>
    %18 = arith.cmpi ne, %16, %17 : vector<1x256xi32>
    %19 = arith.extui %18 : vector<1x256xi1> to vector<1x256xi32>
    %20 = arith.sitofp %19 : vector<1x256xi32> to vector<1x256xf32>
    %c15_i32 = arith.constant 15 : i32
    %21 = vector.broadcast %c15_i32 : i32 to vector<1x256xi32>
    %22 = arith.cmpi ne, %16, %21 : vector<1x256xi32>
    %23 = arith.extui %22 : vector<1x256xi1> to vector<1x256xi32>
    %24 = arith.sitofp %23 : vector<1x256xi32> to vector<1x256xf32>
    %cst = arith.constant 0.000000e+00 : f32
    %25 = vector.broadcast %cst : f32 to vector<8x256xf32>
    %c0 = arith.constant 0 : index
    %c0_4 = arith.constant 0 : index
    %c0_5 = arith.constant 0 : index
    %26 = vector.load %arg2[%c0, %c0_4, %c0_5] : memref<1x4x290xf32, #tpu.memory_space<vmem>>, vector<1x4x256xf32>
    %27 = vector.shape_cast %26 : vector<1x4x256xf32> to vector<4x256xf32>
    %28 = vector.broadcast %20 : vector<1x256xf32> to vector<4x256xf32>
    %29 = arith.mulf %27, %28 : vector<4x256xf32>
    %c0_6 = arith.constant 0 : index
    %c0_7 = arith.constant 0 : index
    %c0_8 = arith.constant 0 : index
    %30 = vector.load %arg1[%c0_6, %c0_7, %c0_8] : memref<9x8x4xf32, #tpu.memory_space<vmem>>, vector<1x8x4xf32>
    %31 = vector.shape_cast %30 : vector<1x8x4xf32> to vector<8x4xf32>
    %cst_9 = arith.constant dense<0.000000e+00> : vector<8x256xf32>
    %32 = tpu.matmul %31, %29, %cst_9 {dimension_numbers = #tpu.dot_dimension_numbers<[1], [0], [0], [1], [0, 0, 1, 1], [], []>} : vector<8x4xf32>, vector<4x256xf32>, vector<8x256xf32> -> vector<8x256xf32>
    %33 = arith.addf %25, %32 : vector<8x256xf32>
    %c0_10 = arith.constant 0 : index
    %c0_11 = arith.constant 0 : index
    %c1 = arith.constant 1 : index
    %34 = vector.load %arg2[%c0_10, %c0_11, %c1] : memref<1x4x290xf32, #tpu.memory_space<vmem>>, vector<1x4x256xf32>
    %35 = vector.shape_cast %34 : vector<1x4x256xf32> to vector<4x256xf32>
    %c1_12 = arith.constant 1 : index
    %c0_13 = arith.constant 0 : index
    %c0_14 = arith.constant 0 : index
    %36 = vector.load %arg1[%c1_12, %c0_13, %c0_14] : memref<9x8x4xf32, #tpu.memory_space<vmem>>, vector<1x8x4xf32>
    %37 = vector.shape_cast %36 : vector<1x8x4xf32> to vector<8x4xf32>
    %cst_15 = arith.constant dense<0.000000e+00> : vector<8x256xf32>
    %38 = tpu.matmul %37, %35, %cst_15 {dimension_numbers = #tpu.dot_dimension_numbers<[1], [0], [0], [1], [0, 0, 1, 1], [], []>} : vector<8x4xf32>, vector<4x256xf32>, vector<8x256xf32> -> vector<8x256xf32>
    %39 = arith.addf %33, %38 : vector<8x256xf32>
    %c0_16 = arith.constant 0 : index
    %c0_17 = arith.constant 0 : index
    %c2 = arith.constant 2 : index
    %40 = vector.load %arg2[%c0_16, %c0_17, %c2] : memref<1x4x290xf32, #tpu.memory_space<vmem>>, vector<1x4x256xf32>
    %41 = vector.shape_cast %40 : vector<1x4x256xf32> to vector<4x256xf32>
    %42 = vector.broadcast %24 : vector<1x256xf32> to vector<4x256xf32>
    %43 = arith.mulf %41, %42 : vector<4x256xf32>
    %c2_18 = arith.constant 2 : index
    %c0_19 = arith.constant 0 : index
    %c0_20 = arith.constant 0 : index
    %44 = vector.load %arg1[%c2_18, %c0_19, %c0_20] : memref<9x8x4xf32, #tpu.memory_space<vmem>>, vector<1x8x4xf32>
    %45 = vector.shape_cast %44 : vector<1x8x4xf32> to vector<8x4xf32>
    %cst_21 = arith.constant dense<0.000000e+00> : vector<8x256xf32>
    %46 = tpu.matmul %45, %43, %cst_21 {dimension_numbers = #tpu.dot_dimension_numbers<[1], [0], [0], [1], [0, 0, 1, 1], [], []>} : vector<8x4xf32>, vector<4x256xf32>, vector<8x256xf32> -> vector<8x256xf32>
    %47 = arith.addf %39, %46 : vector<8x256xf32>
    %c0_22 = arith.constant 0 : index
    %c0_23 = arith.constant 0 : index
    %c16 = arith.constant 16 : index
    %48 = vector.load %arg2[%c0_22, %c0_23, %c16] : memref<1x4x290xf32, #tpu.memory_space<vmem>>, vector<1x4x256xf32>
    %49 = vector.shape_cast %48 : vector<1x4x256xf32> to vector<4x256xf32>
    %50 = vector.broadcast %20 : vector<1x256xf32> to vector<4x256xf32>
    %51 = arith.mulf %49, %50 : vector<4x256xf32>
    %c3 = arith.constant 3 : index
    %c0_24 = arith.constant 0 : index
    %c0_25 = arith.constant 0 : index
    %52 = vector.load %arg1[%c3, %c0_24, %c0_25] : memref<9x8x4xf32, #tpu.memory_space<vmem>>, vector<1x8x4xf32>
    %53 = vector.shape_cast %52 : vector<1x8x4xf32> to vector<8x4xf32>
    %cst_26 = arith.constant dense<0.000000e+00> : vector<8x256xf32>
    %54 = tpu.matmul %53, %51, %cst_26 {dimension_numbers = #tpu.dot_dimension_numbers<[1], [0], [0], [1], [0, 0, 1, 1], [], []>} : vector<8x4xf32>, vector<4x256xf32>, vector<8x256xf32> -> vector<8x256xf32>
    %55 = arith.addf %47, %54 : vector<8x256xf32>
    %c0_27 = arith.constant 0 : index
    %c0_28 = arith.constant 0 : index
    %c17 = arith.constant 17 : index
    %56 = vector.load %arg2[%c0_27, %c0_28, %c17] : memref<1x4x290xf32, #tpu.memory_space<vmem>>, vector<1x4x256xf32>
    %57 = vector.shape_cast %56 : vector<1x4x256xf32> to vector<4x256xf32>
    %c4 = arith.constant 4 : index
    %c0_29 = arith.constant 0 : index
    %c0_30 = arith.constant 0 : index
    %58 = vector.load %arg1[%c4, %c0_29, %c0_30] : memref<9x8x4xf32, #tpu.memory_space<vmem>>, vector<1x8x4xf32>
    %59 = vector.shape_cast %58 : vector<1x8x4xf32> to vector<8x4xf32>
    %cst_31 = arith.constant dense<0.000000e+00> : vector<8x256xf32>
    %60 = tpu.matmul %59, %57, %cst_31 {dimension_numbers = #tpu.dot_dimension_numbers<[1], [0], [0], [1], [0, 0, 1, 1], [], []>} : vector<8x4xf32>, vector<4x256xf32>, vector<8x256xf32> -> vector<8x256xf32>
    %61 = arith.addf %55, %60 : vector<8x256xf32>
    %c0_32 = arith.constant 0 : index
    %c0_33 = arith.constant 0 : index
    %c18 = arith.constant 18 : index
    %62 = vector.load %arg2[%c0_32, %c0_33, %c18] : memref<1x4x290xf32, #tpu.memory_space<vmem>>, vector<1x4x256xf32>
    %63 = vector.shape_cast %62 : vector<1x4x256xf32> to vector<4x256xf32>
    %64 = vector.broadcast %24 : vector<1x256xf32> to vector<4x256xf32>
    %65 = arith.mulf %63, %64 : vector<4x256xf32>
    %c5 = arith.constant 5 : index
    %c0_34 = arith.constant 0 : index
    %c0_35 = arith.constant 0 : index
    %66 = vector.load %arg1[%c5, %c0_34, %c0_35] : memref<9x8x4xf32, #tpu.memory_space<vmem>>, vector<1x8x4xf32>
    %67 = vector.shape_cast %66 : vector<1x8x4xf32> to vector<8x4xf32>
    %cst_36 = arith.constant dense<0.000000e+00> : vector<8x256xf32>
    %68 = tpu.matmul %67, %65, %cst_36 {dimension_numbers = #tpu.dot_dimension_numbers<[1], [0], [0], [1], [0, 0, 1, 1], [], []>} : vector<8x4xf32>, vector<4x256xf32>, vector<8x256xf32> -> vector<8x256xf32>
    %69 = arith.addf %61, %68 : vector<8x256xf32>
    %c0_37 = arith.constant 0 : index
    %c0_38 = arith.constant 0 : index
    %c32 = arith.constant 32 : index
    %70 = vector.load %arg2[%c0_37, %c0_38, %c32] : memref<1x4x290xf32, #tpu.memory_space<vmem>>, vector<1x4x256xf32>
    %71 = vector.shape_cast %70 : vector<1x4x256xf32> to vector<4x256xf32>
    %72 = vector.broadcast %20 : vector<1x256xf32> to vector<4x256xf32>
    %73 = arith.mulf %71, %72 : vector<4x256xf32>
    %c6 = arith.constant 6 : index
    %c0_39 = arith.constant 0 : index
    %c0_40 = arith.constant 0 : index
    %74 = vector.load %arg1[%c6, %c0_39, %c0_40] : memref<9x8x4xf32, #tpu.memory_space<vmem>>, vector<1x8x4xf32>
    %75 = vector.shape_cast %74 : vector<1x8x4xf32> to vector<8x4xf32>
    %cst_41 = arith.constant dense<0.000000e+00> : vector<8x256xf32>
    %76 = tpu.matmul %75, %73, %cst_41 {dimension_numbers = #tpu.dot_dimension_numbers<[1], [0], [0], [1], [0, 0, 1, 1], [], []>} : vector<8x4xf32>, vector<4x256xf32>, vector<8x256xf32> -> vector<8x256xf32>
    %77 = arith.addf %69, %76 : vector<8x256xf32>
    %c0_42 = arith.constant 0 : index
    %c0_43 = arith.constant 0 : index
    %c33 = arith.constant 33 : index
    %78 = vector.load %arg2[%c0_42, %c0_43, %c33] : memref<1x4x290xf32, #tpu.memory_space<vmem>>, vector<1x4x256xf32>
    %79 = vector.shape_cast %78 : vector<1x4x256xf32> to vector<4x256xf32>
    %c7 = arith.constant 7 : index
    %c0_44 = arith.constant 0 : index
    %c0_45 = arith.constant 0 : index
    %80 = vector.load %arg1[%c7, %c0_44, %c0_45] : memref<9x8x4xf32, #tpu.memory_space<vmem>>, vector<1x8x4xf32>
    %81 = vector.shape_cast %80 : vector<1x8x4xf32> to vector<8x4xf32>
    %cst_46 = arith.constant dense<0.000000e+00> : vector<8x256xf32>
    %82 = tpu.matmul %81, %79, %cst_46 {dimension_numbers = #tpu.dot_dimension_numbers<[1], [0], [0], [1], [0, 0, 1, 1], [], []>} : vector<8x4xf32>, vector<4x256xf32>, vector<8x256xf32> -> vector<8x256xf32>
    %83 = arith.addf %77, %82 : vector<8x256xf32>
    %c0_47 = arith.constant 0 : index
    %c0_48 = arith.constant 0 : index
    %c34 = arith.constant 34 : index
    %84 = vector.load %arg2[%c0_47, %c0_48, %c34] : memref<1x4x290xf32, #tpu.memory_space<vmem>>, vector<1x4x256xf32>
    %85 = vector.shape_cast %84 : vector<1x4x256xf32> to vector<4x256xf32>
    %86 = vector.broadcast %24 : vector<1x256xf32> to vector<4x256xf32>
    %87 = arith.mulf %85, %86 : vector<4x256xf32>
    %c8 = arith.constant 8 : index
    %c0_49 = arith.constant 0 : index
    %c0_50 = arith.constant 0 : index
    %88 = vector.load %arg1[%c8, %c0_49, %c0_50] : memref<9x8x4xf32, #tpu.memory_space<vmem>>, vector<1x8x4xf32>
    %89 = vector.shape_cast %88 : vector<1x8x4xf32> to vector<8x4xf32>
    %cst_51 = arith.constant dense<0.000000e+00> : vector<8x256xf32>
    %90 = tpu.matmul %89, %87, %cst_51 {dimension_numbers = #tpu.dot_dimension_numbers<[1], [0], [0], [1], [0, 0, 1, 1], [], []>} : vector<8x4xf32>, vector<4x256xf32>, vector<8x256xf32> -> vector<8x256xf32>
    %91 = arith.addf %83, %90 : vector<8x256xf32>
    %c0_52 = arith.constant 0 : index
    %c0_53 = arith.constant 0 : index
    %c0_54 = arith.constant 0 : index
    %92 = vector.load %arg3[%c0_52, %c0_53, %c0_54] : memref<1x8x256xf32, #tpu.memory_space<vmem>>, vector<1x8x256xf32>
    %93 = vector.shape_cast %92 : vector<1x8x256xf32> to vector<8x256xf32>
    %94 = vector.shape_cast %91 : vector<8x256xf32> to vector<1x8x256xf32>
    tpu.vector_store %arg3[%c0_52, %c0_53, %c0_54], %94 {strides = array<i32>} : memref<1x8x256xf32, #tpu.memory_space<vmem>>, vector<1x8x256xf32>,
    %cst_55 = arith.constant dense<0.000000e+00> : vector<8xf32>
    %95 = vector.multi_reduction <add>, %91, %cst_55 [1] : vector<8x256xf32> to vector<8xf32>
    %96 = vector.shape_cast %95 : vector<8xf32> to vector<8x1xf32>
    %c0_56 = arith.constant 0 : index
    %c0_57 = arith.constant 0 : index
    %c0_58 = arith.constant 0 : index
    %97 = vector.load %arg4[%c0_56, %c0_57, %c0_58] : memref<1x8x1xf32, #tpu.memory_space<vmem>>, vector<1x8x1xf32>
    %98 = vector.shape_cast %97 : vector<1x8x1xf32> to vector<8x1xf32>
    %99 = vector.shape_cast %96 : vector<8x1xf32> to vector<1x8x1xf32>
    tpu.vector_store %arg4[%c0_56, %c0_57, %c0_58], %99 {strides = array<i32>} : memref<1x8x1xf32, #tpu.memory_space<vmem>>, vector<1x8x1xf32>,
    %100 = arith.mulf %91, %91 : vector<8x256xf32>
    %cst_59 = arith.constant dense<0.000000e+00> : vector<8xf32>
    %101 = vector.multi_reduction <add>, %100, %cst_59 [1] : vector<8x256xf32> to vector<8xf32>
    %102 = vector.shape_cast %101 : vector<8xf32> to vector<8x1xf32>
    %c0_60 = arith.constant 0 : index
    %c0_61 = arith.constant 0 : index
    %c0_62 = arith.constant 0 : index
    %103 = vector.load %arg5[%c0_60, %c0_61, %c0_62] : memref<1x8x1xf32, #tpu.memory_space<vmem>>, vector<1x8x1xf32>
    %104 = vector.shape_cast %103 : vector<1x8x1xf32> to vector<8x1xf32>
    %105 = vector.shape_cast %102 : vector<8x1xf32> to vector<1x8x1xf32>
    tpu.vector_store %arg5[%c0_60, %c0_61, %c0_62], %105 {strides = array<i32>} : memref<1x8x1xf32, #tpu.memory_space<vmem>>, vector<1x8x1xf32>,
    return
  }
  func.func @transform_0(%arg0: i32) -> (i32, i32, i32) {
    %c0_i32 = arith.constant 0 : i32
    %c0_i32_0 = arith.constant 0 : i32
    %c0_i32_1 = arith.constant 0 : i32
    %c0_i32_2 = arith.constant 0 : i32
    return %c0_i32, %c0_i32_0, %c0_i32_1 : i32, i32, i32
  }
  func.func @transform_1(%arg0: i32) -> (i32, i32, i32) {
    %c0_i32 = arith.constant 0 : i32
    %c0_i32_0 = arith.constant 0 : i32
    %c0_i32_1 = arith.constant 0 : i32
    return %arg0, %c0_i32, %c0_i32_0 : i32, i32, i32
  }
  func.func @transform_2(%arg0: i32) -> (i32, i32, i32) {
    %c0_i32 = arith.constant 0 : i32
    %c0_i32_0 = arith.constant 0 : i32
    %c0_i32_1 = arith.constant 0 : i32
    return %arg0, %c0_i32, %c0_i32_0 : i32, i32, i32
  }
  func.func @transform_3(%arg0: i32) -> (i32, i32, i32) {
    %c0_i32 = arith.constant 0 : i32
    %c0_i32_0 = arith.constant 0 : i32
    %c0_i32_1 = arith.constant 0 : i32
    return %arg0, %c0_i32, %c0_i32_0 : i32, i32, i32
  }
  func.func @transform_4(%arg0: i32) -> (i32, i32, i32) {
    %c0_i32 = arith.constant 0 : i32
    %c0_i32_0 = arith.constant 0 : i32
    %c0_i32_1 = arith.constant 0 : i32
    return %arg0, %c0_i32, %c0_i32_0 : i32, i32, i32
  }
}

module attributes {stable_mosaic.version = 11 : i64} {
  func.func @_bn_apply_kernel(%arg0: i32, %arg1: memref<1x8x256xf32, #tpu.memory_space<vmem>>, %arg2: memref<8x1xf32, #tpu.memory_space<vmem>>, %arg3: memref<8x1xf32, #tpu.memory_space<vmem>>, %arg4: memref<1x8x256xf32, #tpu.memory_space<vmem>>) attributes {dimension_semantics = [#tpu.dimension_semantics<parallel>], iteration_bounds = array<i64: 2>, scalar_prefetch = 0 : i64, scratch_operands = 0 : i64, tpu.core_type = #tpu.core_type<tc>, window_params = [{transform_indices = @transform_0, window_bounds = array<i64: 1, 8, 256>}, {pipeline_mode = #tpu.pipeline_mode<synchronous>, transform_indices = @transform_1, window_bounds = array<i64: 8, 1>}, {pipeline_mode = #tpu.pipeline_mode<synchronous>, transform_indices = @transform_2, window_bounds = array<i64: 8, 1>}, {transform_indices = @transform_3, window_bounds = array<i64: 1, 8, 256>}]} {
    %c0 = arith.constant 0 : index
    %c0_0 = arith.constant 0 : index
    %c0_1 = arith.constant 0 : index
    %0 = vector.load %arg1[%c0, %c0_0, %c0_1] : memref<1x8x256xf32, #tpu.memory_space<vmem>>, vector<1x8x256xf32>
    %1 = vector.shape_cast %0 : vector<1x8x256xf32> to vector<8x256xf32>
    %c0_2 = arith.constant 0 : index
    %c0_3 = arith.constant 0 : index
    %2 = vector.load %arg2[%c0_2, %c0_3] : memref<8x1xf32, #tpu.memory_space<vmem>>, vector<8x1xf32>
    %3 = vector.broadcast %2 : vector<8x1xf32> to vector<8x256xf32>
    %4 = arith.mulf %1, %3 : vector<8x256xf32>
    %c0_4 = arith.constant 0 : index
    %c0_5 = arith.constant 0 : index
    %5 = vector.load %arg3[%c0_4, %c0_5] : memref<8x1xf32, #tpu.memory_space<vmem>>, vector<8x1xf32>
    %6 = vector.broadcast %5 : vector<8x1xf32> to vector<8x256xf32>
    %7 = arith.addf %4, %6 : vector<8x256xf32>
    %c0_6 = arith.constant 0 : index
    %c0_7 = arith.constant 0 : index
    %c0_8 = arith.constant 0 : index
    %8 = vector.load %arg4[%c0_6, %c0_7, %c0_8] : memref<1x8x256xf32, #tpu.memory_space<vmem>>, vector<1x8x256xf32>
    %9 = vector.shape_cast %8 : vector<1x8x256xf32> to vector<8x256xf32>
    %10 = vector.shape_cast %7 : vector<8x256xf32> to vector<1x8x256xf32>
    tpu.vector_store %arg4[%c0_6, %c0_7, %c0_8], %10 {strides = array<i32>} : memref<1x8x256xf32, #tpu.memory_space<vmem>>, vector<1x8x256xf32>,
    return
  }
  func.func @transform_0(%arg0: i32) -> (i32, i32, i32) {
    %c0_i32 = arith.constant 0 : i32
    %c0_i32_0 = arith.constant 0 : i32
    %c0_i32_1 = arith.constant 0 : i32
    return %arg0, %c0_i32, %c0_i32_0 : i32, i32, i32
  }
  func.func @transform_1(%arg0: i32) -> (i32, i32) {
    %c0_i32 = arith.constant 0 : i32
    %c0_i32_0 = arith.constant 0 : i32
    %c0_i32_1 = arith.constant 0 : i32
    return %c0_i32, %c0_i32_0 : i32, i32
  }
  func.func @transform_2(%arg0: i32) -> (i32, i32) {
    %c0_i32 = arith.constant 0 : i32
    %c0_i32_0 = arith.constant 0 : i32
    %c0_i32_1 = arith.constant 0 : i32
    return %c0_i32, %c0_i32_0 : i32, i32
  }
  func.func @transform_3(%arg0: i32) -> (i32, i32, i32) {
    %c0_i32 = arith.constant 0 : i32
    %c0_i32_0 = arith.constant 0 : i32
    %c0_i32_1 = arith.constant 0 : i32
    return %arg0, %c0_i32, %c0_i32_0 : i32, i32, i32
  }
}

</mosaic_0001>

<bundles_post_ra>
// kernel: conv_bn.3
= control target key start
LH: loop header
LB: loop body
LE: loop exit
PB: predicated region body
PF: predicated region fallthrough
CT: control target
= control target key end

     0   :  { %s298_s12 = smov 0   ;;  %s321_s0 = inlined_call_operand.vmem [shape: f32[2,8,256], index: 0, kind: input, shape index: {}]   ;;  %s322_s1 = inlined_call_operand.vmem [shape: f32[8,1], index: 1, kind: input, shape index: {}]   ;;  %s323_s2 = inlined_call_operand.vmem [shape: f32[8,1], index: 2, kind: input, shape index: {}]   ;;  %s324_s3 = inlined_call_operand.vmem [shape: f32[2,8,256], index: 3, kind: output, shape index: {}]  }
   0x1 LB: > { %s246_s13 = sadd.s32 4294967295, %s275_s12   ;;  %p250_p0 = scmp.ge.s32.totalorder %s275_s12, 1  ;;  %s275_s12 = sphi %s298_s12, %s13_s12  }
   0x2   : > { %p137_p1 = scmp.lt.s32.totalorder %s275_s12, 3 }
   0x4   : > { %p138_p2 = pnand %p250_p0, %p137_p1 }
   0x5   : > { %v173_v0 = vld [vmem:[%s322_s1] sm:$0xff] (!%p138_p2)  ;;  %v277_v1 = vmov (!%p138_p2), 0   ;;  %p161_p3 = scmp.lt.s32.totalorder (!%p138_p2), %s246_s13, 1 }
   0x6   : > { %141 = sbr.rel (%p138_p2) target bundleno = 142 (0x8e), region = 32  ;;  %268 = vset.pattern.permute.xlu0 (!%p138_p2), %v277_v1  ;;  %v181_v2 = vld [vmem:[%s323_s2] sm:$0xff] (!%p138_p2) }
   0x7   : > { %176 = vperm.xlu0 (!%p138_p2), %268, %v173_v0  }
   0xb   : > { %184 = vperm.xlu0 (!%p138_p2), %268, %v181_v2  }
   0xd   : > { %s326_s13 = smov (!%p161_p3, %s246_s13), 1 }
   0xe   : > { %s257_s18 = sshll.u32 %s326_s13, 4 }
   0xf   : > { %s165_s21 = scalar_lea.vmem %s321_s0, %s257_s18  ;;  %s170_s24 = scalar_lea.vmem %s324_s3, %s257_s18 }
  0x10   : > { %v171_v4 = vld [vmem:[%s165_s21] sm:$0xff]  ;;  %v172_v5 = vld [vmem:[%s165_s21 + $0x8] sm:$0xff] }
  0x86   : > { %v177_v3 = vpop.permute.xlu0 %176 }
  0x87   : > { %v179_v6 = vmul.f32 %v177_v3, %v171_v4  ;;  %v180_v7 = vmul.f32 %v177_v3, %v172_v5 }
  0x8a   : > { %v185_v8 = vpop.permute.xlu0 %184 }
  0x8b   : > { %v187_v9 = vadd.f32 %v185_v8, %v179_v6  ;;  %v188_v10 = vadd.f32 %v185_v8, %v180_v7 }
  0x8d   : > { %189 = vst [vmem:[%s170_s24] sm:$0xff] %v187_v9  ;;  %190 = vst [vmem:[%s170_s24 + $0x8] sm:$0xff] %v188_v10 }
  0x8e PF: > { %s13_s12 = sadd.s32 1, %s275_s12  }
  0x8f   : > { %p10_p4 = scmp.ge.s32.totalorder %s13_s12, 4  }
  0x91   :  { %12 = sbr.rel (!%p10_p4) target bundleno = 1 (0x1), region = 62 }

// kernel: conv_bn.2
= control target key start
LH: loop header
LB: loop body
LE: loop exit
PB: predicated region body
PF: predicated region fallthrough
CT: control target
= control target key end

     0   :  { %s1429_s15 = smov 0   ;;  %s1566_s0 = inlined_call_operand.vmem [shape: f32[9,8,4], index: 0, kind: input, shape index: {}]   ;;  %s1567_s1 = inlined_call_operand.vmem [shape: f32[2,4,290], index: 1, kind: input, shape index: {}]   ;;  %s1568_s2 = inlined_call_operand.vmem [shape: f32[2,8,256], index: 2, kind: output, shape index: {0}]   ;;  %s1569_s3 = inlined_call_operand.vmem [shape: f32[2,8,1], index: 3, kind: output, shape index: {1}]   ;;  %s1570_s4 = inlined_call_operand.vmem [shape: f32[2,8,1], index: 4, kind: output, shape index: {2}]  }
   0x1 LB: > { %s1290_s16 = sadd.s32 4294967295, %s1388_s15   ;;  %p1294_p0 = scmp.ge.s32.totalorder %s1388_s15, 1  ;;  %s1388_s15 = sphi %s1429_s15, %s15_s15  }
   0x2   : > { %p167_p1 = scmp.lt.s32.totalorder %s1388_s15, 3 }
   0x4   : > { %p168_p2 = pnand %p1294_p0, %p167_p1 }
   0x5   : > { %v219_v0 = vlaneseq (!%p168_p2)  ;;  %v1390_v1 = vmov (!%p168_p2), 0.0   ;;  %p201_p3 = scmp.lt.s32.totalorder (!%p168_p2), %s1290_s16, 1  ;;  %s1391_s21 = smov (!%p168_p2), 18   ;;  %vm754_vm4 = vcmask (!%p168_p2), 146432   ;;  %vm859_vm5 = vcmask (!%p168_p2), 261120   ;;  %v1319_v39 = vld [vmem:[%s1566_s0 + $0x20] sm:$0xff] (!%p168_p2) }
   0x6   : > { %171 = sbr.rel (%p168_p2) target bundleno = 652 (0x28c), region = 28  ;;  %740 = vmatprep.mubr.f32.mxu0 (!%p168_p2), %v1390_v1  ;;  %353 = vmatprep.mubr.f32.mxu1 (!%p168_p2), %v1390_v1  ;;  %s1392_s22 = smov (!%p168_p2), 2   ;;  %vm666_vm6 = vcmask (!%p168_p2), 908288   ;;  %vm284_vm7 = vcmask (!%p168_p2), 1043456   ;;  %vm448_vm8 = vcmask (!%p168_p2), 15360   ;;  %vm280_vm9 = vcmask (!%p168_p2), 31744  }
   0x7   : > { %v220_v2 = vand.u32 (!%p168_p2), 127, %v219_v0  ;;  %s1393_s23 = smov (!%p168_p2), 32   ;;  %s1394_s24 = smov (!%p168_p2), 16   ;;  %vm277_vm10 = vcmask (!%p168_p2), 1039360   ;;  %vm553_vm11 = vcmask (!%p168_p2), 130048   ;;  %vm1060_vm12 = vcmask (!%p168_p2), 277504  }
   0x8   : > { %s1395_s25 = smov (!%p168_p2), 34   ;;  %s1396_s26 = smov (!%p168_p2), 111   ;;  %v1304_v53 = vld [vmem:[%s1566_s0 + $0x8] sm:$0xff] (!%p168_p2)  ;;  %v264_v61 = vld [vmem:[%s1566_s0] sm:$0xff] (!%p168_p2)  ;;  %vm771_vm13 = vcmask (!%p168_p2), 900096   ;;  %vm876_vm14 = vcmask (!%p168_p2), 785408  }
   0x9   : > { %v221_v3 = vadd.s32 (!%p168_p2), 128, %v220_v2  ;;  %v226_v4 = vand.u32 (!%p168_p2), 15, %v220_v2  ;;  %s1397_s27 = smov (!%p168_p2), 127   ;;  %s1398_s28 = smov (!%p168_p2), 110   ;;  %vm465_vm15 = vcmask (!%p168_p2), 1031168  }
   0xa   : > { %s1399_s29 = smov (!%p168_p2), 96   ;;  %s1400_s6 = smov (!%p168_p2), 95  }
   0xb   : > { %v233_v5 = vand.u32 (!%p168_p2), 15, %v221_v3  ;;  %vm252_vm0 = vcmp.ne.s32.totalorder (!%p168_p2), %v226_v4, 15  ;;  %vm246_vm1 = vcmp.ne.s32.totalorder (!%p168_p2), %v226_v4, 0  ;;  %s1401_s7 = smov (!%p168_p2), 126   ;;  %s1402_s12 = smov (!%p168_p2), 112  }
   0xc   : > { %v1302_v6 = vsel (!%p168_p2), %vm252_vm0, 1.0, %v1390_v1  ;;  %v1300_v8 = vsel (!%p168_p2), %vm246_vm1, 1.0, %v1390_v1  ;;  %s1403_s13 = smov (!%p168_p2), 94   ;;  %vm972_vm0 = vcmask (!%p168_p2), 777216   ;;  %vm570_vm1 = vcmask (!%p168_p2), 916480  }
   0xd   : > { %s1572_s16 = smov (!%p201_p3, %s1290_s16), 1  ;;  %vm253_vm2 = vcmp.ne.s32.totalorder %v233_v5, 15  ;;  %vm247_vm3 = vcmp.ne.s32.totalorder %v233_v5, 0 }
   0xe   : > { %s1358_s17 = smul.u32 12, %s1572_s16  ;;  %v1303_v7 = vsel %vm253_vm2, 1.0, %v1390_v1  ;;  %v1301_v9 = vsel %vm247_vm3, 1.0, %v1390_v1  ;;  %vm1077_vm2 = vcmask 769024   ;;  %vm1165_vm3 = vcmask 7168  }
   0xf   : > { %v444_v10 = vcombine.low %v1302_v6, %v1303_v7  ;;  %v261_v11 = vcombine.low %v1300_v8, %v1301_v9 }
  0x10   : > { %s1449_s20 = scalar_lea.vmem %s1567_s1, %s1358_s17 }
  0x11   : > { %751 = vrot.lane.b32.xlu0 %v444_v10, %s1391_s21  ;;  %445 = vrot.lane.b32.xlu1 %v444_v10, %s1392_s22  ;;  %v1452_v12 = vld [vmem:[%s1449_s20] sm:$0xff]  ;;  %v654_v14 = vld [vmem:[%s1449_s20 + $0x8] sm:$0xf] }
  0x12   : > { %v659_v13 = vcombine.high %v1452_v12, %v1452_v12  ;;  %v265_v15 = vld [vmem:[%s1449_s20 + $0x8] sm:$0xf]  ;;  %v263_v42 = vmul.f32 %v1452_v12, %v261_v11 }
  0x13   : > { %v750_v17 = vld [vmem:[%s1449_s20 + $0x8] sm:$0xf] }
  0x14   : > { %v855_v22 = vld [vmem:[%s1449_s20 + $0x8] sm:$0xf]  ;;  %v361_v50 = vcombine.high %v263_v42, %v263_v42 }
  0x15   : > { %856 = vrot.lane.b32.xlu0 %v261_v11, %s1393_s23  ;;  %550 = vrot.lane.b32.xlu1 %v261_v11, %s1394_s24  ;;  %v441_v32 = vld [vmem:[%s1449_s20 + $0x8] sm:$0xf] }
  0x16   : > { %v960_v58 = vld [vmem:[%s1449_s20 + $0x8] sm:$0xf] }
  0x17   : > { %v549_v62 = vld [vmem:[%s1449_s20 + $0x8] sm:$0xf] }
  0x18   : > { %v1056_v2 = vld [vmem:[%s1449_s20 + $0x8] sm:$0xf] }
  0x19   : > { %1057 = vrot.lane.b32.xlu0 %v444_v10, %s1395_s25  ;;  %662 = vrot.lane.b32.xlu1 %v659_v13, %s1396_s26  ;;  %v1323_v11 = vld [vmem:[%s1566_s0 + $0x28] sm:$0xff] }
  0x1d   : > { %664 = vrot.lane.b32.xlu0 %v654_v14, %s1396_s26  ;;  %660 = vrot.lane.b32.xlu1 %v1452_v12, %s1396_s26 }
  0x21   : > { %273 = vrot.lane.b32.xlu0 %v659_v13, %s1397_s27  ;;  %275 = vrot.lane.b32.xlu1 %v265_v15, %s1397_s27 }
  0x25   : > { %271 = vrot.lane.b32.xlu0 %v1452_v12, %s1397_s27 }
  0x83   : > { %v752_v16 = vpop.permute.xlu0 %751  ;;  %v446_v18 = vpop.permute.xlu1 %445 }
  0x84   : > { %v753_v19 = vrot.slane %v752_v16, 4  ;;  %v447_v33 = vrot.slane %v446_v18, 4 }
  0x86   : > { %v759_v20 = vmul.f32 %v753_v19, %v750_v17  ;;  %v755_v24 = vsel %vm754_vm4, %v753_v19, %v752_v16  ;;  %v453_v40 = vmul.f32 %v447_v33, %v441_v32  ;;  %v449_v43 = vsel %vm448_vm8, %v447_v33, %v446_v18  ;;  %v1327_v18 = vld [vmem:[%s1566_s0 + $0x30] sm:$0xff]  ;;  %v1315_v33 = vld [vmem:[%s1566_s0 + $0x18] sm:$0xff] }
  0x87   : > { %v857_v21 = vpop.permute.xlu0 %856  ;;  %v1462_v23 = vpop.permute.xlu1 %550  ;;  %v758_v28 = vmul.f32 %v755_v24, %v1452_v12  ;;  %v452_v49 = vmul.f32 %v1452_v12, %v449_v43 }
  0x88   : > { %v858_v25 = vrot.slane %v857_v21, 4  ;;  %769 = vrot.lane.b32.xlu1 %v759_v20, %s1398_s28  ;;  %v552_v41 = vrot.slane %v1462_v23, 4 }
  0x89   : > { %v764_v34 = vcombine.high %v758_v28, %v758_v28  ;;  %v458_v57 = vcombine.high %v452_v49, %v452_v49 }
  0x8a   : > { %v860_v26 = vsel %vm859_vm5, %v858_v25, %v857_v21  ;;  %v864_v27 = vmul.f32 %v858_v25, %v855_v22  ;;  %v554_v47 = vsel %vm553_vm11, %v552_v41, %v1462_v23  ;;  %v558_v0 = vmul.f32 %v552_v41, %v549_v62  ;;  %v1311_v23 = vld [vmem:[%s1566_s0 + $0x10] sm:$0xff] }
  0x8b   : > { %v863_v29 = vmul.f32 %v860_v26, %v1452_v12  ;;  %v1466_v30 = vpop.permute.xlu0 %1057  ;;  %v663_v31 = vpop.permute.xlu1 %662  ;;  %v557_v54 = vmul.f32 %v1452_v12, %v554_v47 }
  0x8c   : > { %874 = vrot.lane.b32.xlu1 %v864_v27, %s1399_s29  ;;  %v1059_v48 = vrot.slane %v1466_v30, 4 }
  0x8d   : > { %870 = vrot.lane.b32.xlu0 %v863_v29, %s1399_s29  ;;  %v869_v51 = vcombine.high %v863_v29, %v863_v29  ;;  %v563_v60 = vcombine.high %v557_v54, %v557_v54 }
  0x8e   : > { %v1061_v56 = vsel %vm1060_vm12, %v1059_v48, %v1466_v30  ;;  %v1065_v3 = vmul.f32 %v1059_v48, %v1056_v2 }
  0x8f   : > { %v665_v35 = vpop.permute.xlu0 %664  ;;  %v661_v36 = vpop.permute.xlu1 %660  ;;  %v1064_v59 = vmul.f32 %v1061_v56, %v1452_v12 }
  0x90   : > { %765 = vrot.lane.b32.xlu1 %v758_v28, %s1398_s28  ;;  %v668_v37 = vsel %vm666_vm6, %v663_v31, %v665_v35  ;;  %v667_v38 = vsel %vm666_vm6, %v661_v36, %v663_v31  ;;  %v1331_v28 = vld [vmem:[%s1566_s0 + $0x38] sm:$0xff] }
  0x91   : > { %767 = vrot.lane.b32.xlu0 %v764_v34, %s1398_s28  ;;  %1320 = vmatprep.subr.msk.mxu0 %vm284_vm7, %v668_v37  ;;  %v1070_v63 = vcombine.high %v1064_v59, %v1064_v59  ;;  %s1341_s28 = sshll.u32 %s1572_s16, 4 }
  0x92   : > { %1321 = vmatpush1.msk.msra.mxu0 %vm284_vm7, %v667_v38  ;;  %s210_s5 = scalar_lea.vmem %s1568_s2, %s1341_s28 }
  0x93   : > { %v274_v44 = vpop.permute.xlu0 %273  ;;  %v276_v45 = vpop.permute.xlu1 %275  ;;  %1322 = vmatmul.mubr.msk.f32.vlgmr.msra.gmra.mrb[0].mxu0 %vm280_vm9, %v1319_v39 }
  0x94   : > { %968 = vrot.lane.b32.xlu1 %v659_v13, %s1400_s6  ;;  %v279_v46 = vsel %vm277_vm10, %v274_v44, %v276_v45  ;;  %845 = vmatprep.mubr.f32.mxu0 %v1390_v1 }
  0x95   : > { %463 = vrot.lane.b32.xlu0 %v453_v40, %s1401_s7  ;;  %1305 = vmatprep.subr.msk.mxu1 %vm284_vm7, %v279_v46 }
  0x97   : > { %v272_v52 = vpop.permute.xlu0 %271 }
  0x98   : > { %459 = vrot.lane.b32.xlu1 %v452_v49, %s1401_s7  ;;  %v278_v55 = vsel %vm277_vm10, %v272_v52, %v274_v44 }
  0x99   : > { %872 = vrot.lane.b32.xlu0 %v869_v51, %s1399_s29  ;;  %1306 = vmatpush1.msk.msra.mxu1 %vm284_vm7, %v278_v55 }
  0x9a   : > { %1307 = vmatmul.mubr.msk.f32.vlgmr.msra.gmra.mrb[0].mxu1 %vm280_vm9, %v1304_v53  ;;  %1308 = vmatprep.subr.msk.mxu1 %vm284_vm7, %v361_v50 }
  0x9b   : > { %1309 = vmatpush1.msk.msra.mxu1 %vm284_vm7, %v263_v42  ;;  %433 = vmatprep.mubr.f32.mxu1 %v1390_v1 }
  0x9c   : > { %461 = vrot.lane.b32.xlu1 %v458_v57, %s1401_s7 }
  0x9d   : > { %970 = vrot.lane.b32.xlu0 %v960_v58, %s1400_s6 }
  0xa0   : > { %566 = vrot.lane.b32.xlu1 %v563_v60, %s1402_s12 }
  0xa1   : > { %966 = vrot.lane.b32.xlu0 %v1452_v12, %s1400_s6  ;;  %s1298_s6 = sshll.u32 %s1572_s16, 3 }
  0xa2   : > { %1310 = vmatmul.mubr.msk.f32.vlgmr.msra.gmra.mrb[0].mxu1 %vm280_vm9, %v264_v61  ;;  %s214_s9 = scalar_lea.vmem %s1569_s3, %s1298_s6 }
  0xa3   : > { %539 = vmatprep.mubr.f32.mxu1 %v1390_v1 }
  0xa4   : > { %1073 = vrot.lane.b32.xlu1 %v1070_v63, %s1403_s13 }
  0xa5   : > { %568 = vrot.lane.b32.xlu0 %v558_v0, %s1402_s12 }
  0xa8   : > { %564 = vrot.lane.b32.xlu1 %v557_v54, %s1402_s12  ;;  %s218_s12 = scalar_lea.vmem %s1570_s4, %s1298_s6 }
  0xa9   : > { %1075 = vrot.lane.b32.xlu0 %v1065_v3, %s1403_s13 }
  0xad   : > { %1071 = vrot.lane.b32.xlu0 %v1064_v59, %s1403_s13 }
  0xfa   : > { %v770_v4 = vpop.permute.xlu1 %769 }
  0xfe   : > { %v875_v5 = vpop.permute.xlu1 %874 }
  0xff   : > { %v871_v6 = vpop.permute.xlu0 %870 }
 0x102   : > { %v766_v7 = vpop.permute.xlu1 %765 }
 0x103   : > { %v768_v8 = vpop.permute.xlu0 %767 }
 0x104   : > { %v772_v9 = vsel %vm771_vm13, %v766_v7, %v768_v8  ;;  %v773_v10 = vsel %vm771_vm13, %v768_v8, %v770_v4 }
 0x105   : > { %1324 = vmatprep.subr.msk.mxu0 %vm284_vm7, %v773_v10 }
 0x106   : > { %v969_v12 = vpop.permute.xlu1 %968  ;;  %1325 = vmatpush1.msk.msra.mxu0 %vm284_vm7, %v772_v9 }
 0x107   : > { %v464_v13 = vpop.permute.xlu0 %463  ;;  %1326 = vmatmul.mubr.msk.f32.vlgmr.msra.gmra.mrb[0].mxu0 %vm280_vm9, %v1323_v11 }
 0x108   : > { %950 = vmatprep.mubr.f32.mxu0 %v1390_v1 }
 0x10a   : > { %v460_v14 = vpop.permute.xlu1 %459 }
 0x10b   : > { %v873_v15 = vpop.permute.xlu0 %872 }
 0x10c   : > { %v877_v16 = vsel %vm876_vm14, %v871_v6, %v873_v15  ;;  %v878_v17 = vsel %vm876_vm14, %v873_v15, %v875_v5 }
 0x10d   : > { %1328 = vmatprep.subr.msk.mxu0 %vm284_vm7, %v878_v17 }
 0x10e   : > { %v462_v19 = vpop.permute.xlu1 %461  ;;  %1329 = vmatpush1.msk.msra.mxu0 %vm284_vm7, %v877_v16 }
 0x10f   : > { %v466_v20 = vsel %vm465_vm15, %v460_v14, %v462_v19  ;;  %v467_v21 = vsel %vm465_vm15, %v462_v19, %v464_v13  ;;  %v971_v22 = vpop.permute.xlu0 %970  ;;  %1330 = vmatmul.mubr.msk.f32.vlgmr.msra.gmra.mrb[0].mxu0 %vm280_vm9, %v1327_v18 }
 0x110   : > { %v974_v24 = vsel %vm972_vm0, %v969_v12, %v971_v22  ;;  %1312 = vmatprep.subr.msk.mxu1 %vm284_vm7, %v467_v21  ;;  %1046 = vmatprep.mubr.f32.mxu0 %v1390_v1 }
 0x111   : > { %1313 = vmatpush1.msk.msra.mxu1 %vm284_vm7, %v466_v20  ;;  %1332 = vmatprep.subr.msk.mxu0 %vm284_vm7, %v974_v24 }
 0x112   : > { %v567_v25 = vpop.permute.xlu1 %566  ;;  %1314 = vmatmul.mubr.msk.f32.vlgmr.msra.gmra.mrb[0].mxu1 %vm280_vm9, %v1311_v23 }
 0x113   : > { %v967_v26 = vpop.permute.xlu0 %966  ;;  %644 = vmatprep.mubr.f32.mxu1 %v1390_v1 }
 0x114   : > { %v973_v27 = vsel %vm972_vm0, %v967_v26, %v969_v12 }
 0x115   : > { %1333 = vmatpush1.msk.msra.mxu0 %vm284_vm7, %v973_v27 }
 0x116   : > { %v1074_v29 = vpop.permute.xlu1 %1073 }
 0x117   : > { %v569_v30 = vpop.permute.xlu0 %568  ;;  %1334 = vmatmul.mubr.msk.f32.vlgmr.msra.gmra.mrb[0].mxu0 %vm280_vm9, %v1331_v28 }
 0x118   : > { %v572_v31 = vsel %vm570_vm1, %v567_v25, %v569_v30  ;;  %1151 = vmatprep.mubr.f32.mxu0 %v1390_v1  ;;  %v1335_v1 = vld [vmem:[%s1566_s0 + $0x40] sm:$0xff] }
 0x119   : > { %1316 = vmatprep.subr.msk.mxu1 %vm284_vm7, %v572_v31 }
 0x11a   : > { %v565_v32 = vpop.permute.xlu1 %564 }
 0x11b   : > { %v571_v34 = vsel %vm570_vm1, %v565_v32, %v567_v25  ;;  %v1076_v35 = vpop.permute.xlu0 %1075 }
 0x11c   : > { %v1079_v36 = vsel %vm1077_vm2, %v1074_v29, %v1076_v35  ;;  %1317 = vmatpush1.msk.msra.mxu1 %vm284_vm7, %v571_v34 }
 0x11d   : > { %1318 = vmatmul.mubr.msk.f32.vlgmr.msra.gmra.mrb[0].mxu1 %vm280_vm9, %v1315_v33  ;;  %1336 = vmatprep.subr.msk.mxu0 %vm284_vm7, %v1079_v36 }
 0x11f   : > { %v1072_v37 = vpop.permute.xlu0 %1071 }
 0x120   : > { %v1078_v38 = vsel %vm1077_vm2, %v1072_v37, %v1074_v29 }
 0x121   : > { %1337 = vmatpush1.msk.msra.mxu0 %vm284_vm7, %v1078_v38 }
 0x122   : > { %1338 = vmatmul.mubr.msk.f32.vlgmr.msra.gmra.mrb[0].mxu0 %vm280_vm9, %v1335_v1 }
 0x1f0   : > { %v646_v39 = vpop.f32.mrb[0].mxu1 }
 0x1f1   : > { %v648_v40 = vpop.f32.mrb[1].mxu1 }
 0x1f5   : > { %v1153_v41 = vpop.f32.mrb[0].mxu0 }
 0x1f6   : > { %v1342_v42 = vadd.f32 %v1153_v41, %v646_v39  ;;  %v1155_v43 = vpop.f32.mrb[1].mxu0 }
 0x1f7   : > { %v1343_v44 = vadd.f32 %v1155_v43, %v648_v40 }
 0x1f8   : > { %1160 = vst [vmem:[%s210_s5] sm:$0xff] %v1342_v42  ;;  %v1167_v45 = vmul.f32 %v1342_v42, %v1342_v42 }
 0x1f9   : > { %1161 = vst [vmem:[%s210_s5 + $0x8] sm:$0xff] %v1343_v44  ;;  %v1162_v46 = vadd.f32 %v1343_v44, %v1342_v42  ;;  %v1168_v47 = vmul.f32 %v1343_v44, %v1343_v44 }
 0x1fb   : > { %1163 = vadd.xlane.f32.xlu1 %v1162_v46  ;;  %v1169_v48 = vadd.f32 %v1168_v47, %v1167_v45 }
 0x1fd   : > { %1170 = vadd.xlane.f32.xlu0 %v1169_v48 }
 0x288   : > { %v1164_v49 = vpop.xlane.xlu1 %1163 }
 0x289   : > { %1166 = vst.msk [vmem:[%s214_s9] sm:$0xff] %vm1165_vm3, %v1164_v49 }
 0x28a   : > { %v1171_v50 = vpop.xlane.xlu0 %1170 }
 0x28b   : > { %1172 = vst.msk [vmem:[%s218_s12] sm:$0xff] %vm1165_vm3, %v1171_v50 }
 0x28c PF: > { %s15_s15 = sadd.s32 1, %s1388_s15  }
 0x28d   : > { %p12_p4 = scmp.ge.s32.totalorder %s15_s15, 4  }
 0x28f   :  { %14 = sbr.rel (!%p12_p4) target bundleno = 1 (0x1), region = 90 }

</bundles_post_ra>
